<compile_context>
chip_gen: v6e
topology: v6e:2x2x1
jax: 0.10.0
libtpu: 0.0.40
codegen_flags: <defaults>
</compile_context>

<pallas_src>
import jax
import jax.numpy as jnp
from jax.experimental import pallas as pl
from jax.experimental.pallas import tpu as pltpu


def _elu(x):
    # ELU with alpha=1:  x if x>0 else exp(x)-1   (clamp arg of exp for safety)
    return jnp.where(x > 0.0, x, jnp.exp(jnp.minimum(x, 0.0)) - 1.0)


def nsm_cell_kernel(node_pack_ref,    # (N, P*H + 1) bf16 : [node_attrs_flat | distribution]
                    edge_attrs_ref,   # (E, H)        bf16
                    batch_pack_ref,   # (B, P*H+H+1)  bf16 : [prop_sim⊗instr | instr | rel_sim]
                    w_pack_ref,       # (P*H+H+2, H)  bf16 : [w_np_flat ; w_edge ; w_ns ; w_rs]
                    node_oh_ref,      # (N, B) bf16 one-hot: node  -> batch index
                    node_ohT_ref,     # (B, N) bf16 one-hot: batch -> node (lane-dense over N)
                    edge_b_oh_ref,    # (E, B) bf16 one-hot: edge  -> batch index
                    edge_src_oh_ref,  # (E, N) bf16 one-hot: edge  -> source node
                    edge_tgt_ohT_ref, # (N, E) bf16 one-hot: target node <- edge
                    out_ref):         # (1, N) f32 next_distribution (lane-major)
    f32 = jnp.float32
    bf16 = jnp.bfloat16
    PH = node_pack_ref.shape[1] - 1          # P * H
    H = edge_attrs_ref.shape[1]

    npk = node_pack_ref[...]                 # (N, PH+1)
    bp = batch_pack_ref[...]                 # (B, PH+H+1)
    wp = w_pack_ref[...]                     # (PH+H+2, H)
    node_oh = node_oh_ref[...]               # (N, B)
    ohT = node_ohT_ref[...].astype(f32)      # (B, N)

    # ---- node scores: single K=P*H matmul (the per-property loop is folded) ----
    pi_n = jnp.dot(node_oh, bp[:, :PH], preferred_element_type=f32)             # (N, PH)
    x = (pi_n * npk[:, :PH].astype(f32)).astype(bf16)                            # (N, PH)
    node_scores = _elu(jnp.dot(x, wp[:PH, :], preferred_element_type=f32))       # (N, H)

    # ---- edge scores ----
    instr_e = jnp.dot(edge_b_oh_ref[...], bp[:, PH:PH + H],
                      preferred_element_type=f32)                                # (E, H)
    e_in = (instr_e * edge_attrs_ref[...].astype(f32)).astype(bf16)              # (E, H)
    edge_scores = _elu(jnp.dot(e_in, wp[PH:PH + H, :],
                               preferred_element_type=f32))                      # (E, H)

    # ---- relation path: gather source distribution, weight messages, scatter-sum ----
    dist_src = jnp.dot(edge_src_oh_ref[...], npk[:, PH:PH + 1],
                       preferred_element_type=f32)                               # (E, 1)
    msg = (dist_src * edge_scores).astype(bf16)                                  # (E, H)
    agg = jnp.dot(edge_tgt_ohT_ref[...], msg, preferred_element_type=f32)        # (N, H)

    # ---- stacked score projections, transposed layout (N on the lane axis) ----
    w_sc = wp[PH + H:PH + H + 2, :].astype(f32)      # (2, H): [w_node_score ; w_relation_score]
    dn = (((1,), (1,)), ((), ()))                    # contract last dims (x @ w.T form)
    s_state_t = jax.lax.dot_general(w_sc[0:1, :], node_scores, dn,
                                    preferred_element_type=f32)                  # (1, N)
    s_rel_t = jax.lax.dot_general(w_sc[1:2, :], agg, dn,
                                  preferred_element_type=f32)                    # (1, N)
    s = jnp.concatenate([s_state_t, s_rel_t], axis=0)                            # (2, N)

    # ---- one vectorized segment softmax over nodes of the same graph ----
    masked = jnp.where(ohT[None, :, :] > 0.0, s[:, None, :], jnp.float32(-1e30)) # (2, B, N)
    gmax = jnp.max(masked, axis=-1)                                              # (2, B)
    gmax_n = jnp.dot(gmax, ohT, preferred_element_type=f32)                      # (2, N)
    e = jnp.exp(s - gmax_n)                                                      # (2, N)
    gsum = jax.lax.dot_general(e, ohT, dn, preferred_element_type=f32)           # (2, B)
    gsum_n = jnp.dot(gsum, ohT, preferred_element_type=f32)                      # (2, N)
    p = e / gsum_n                                                               # rows: [state, relation]

    # ---- blend by relation similarity; lane-dense (1, N) output ----
    rel_col = bp[:, PH + H:PH + H + 1].astype(f32)                               # (B, 1)
    rel_row = jnp.sum(rel_col * ohT, axis=0, keepdims=True)                      # (1, N)
    out_ref[...] = rel_row * p[1:2, :] + (1.0 - rel_row) * p[0:1, :]


def nsm_cell_forward(params, node_attrs, edge_indices, edge_attrs, node_indices,
                     edge_batch_indices, instruction_batch, distribution,
                     node_prop_similarities, relation_similarity):
    """Pallas wrapper; mirrors NSMCell.forward (dropout = identity)."""
    w_np, w_edge, w_ns, w_rs = params
    N, P, H = node_attrs.shape
    E = edge_attrs.shape[0]
    B = instruction_batch.shape[0]
    PH = P * H
    f32, bf16 = jnp.float32, jnp.bfloat16

    # -- packed operands (fold the P-loop; free reshapes, no transpose) --
    node_pack = jnp.concatenate(
        [node_attrs.reshape(N, PH), distribution.reshape(N, 1)], axis=1).astype(bf16)
    prop_instr = (jnp.repeat(node_prop_similarities, H, axis=1)       # [b, p*H+h] = prop[b,p]
                  * jnp.tile(instruction_batch, (1, P)))              # [b, p*H+h] = instr[b,h]
    batch_pack = jnp.concatenate(
        [prop_instr, instruction_batch, relation_similarity.reshape(B, 1)],
        axis=1).astype(bf16)                                          # (B, PH+H+1)
    w_pack = jnp.concatenate(
        [w_np.reshape(PH, H), w_edge, w_ns.reshape(1, H), w_rs.reshape(1, H)],
        axis=0).astype(bf16)                                          # (PH+H+2, H)

    # -- one-hot gather/scatter operands (0/1 exact in bf16; half the DMA bytes) --
    node_oh = (node_indices[:, None] == jnp.arange(B)[None, :]).astype(bf16)       # (N, B)
    node_ohT = (jnp.arange(B)[:, None] == node_indices[None, :]).astype(bf16)      # (B, N)
    edge_b_oh = (edge_batch_indices[:, None] == jnp.arange(B)[None, :]).astype(bf16)   # (E, B)
    edge_src_oh = (edge_indices[0][:, None] == jnp.arange(N)[None, :]).astype(bf16)    # (E, N)
    edge_tgt_ohT = (jnp.arange(N)[:, None] == edge_indices[1][None, :]).astype(bf16)   # (N, E)

    flops = 2 * (N * B * PH + N * PH * H      # node gather + folded node-score matmul
                 + E * B * H + E * H * H      # edge gather + edge-score matmul
                 + E * N + N * E * H          # distribution gather + scatter-sum
                 + 2 * N * H + 4 * B * N)     # score projections + softmax matmuls
    in_bytes = 2 * (node_pack.size + edge_attrs.size + batch_pack.size + w_pack.size
                    + node_oh.size + node_ohT.size + edge_b_oh.size
                    + edge_src_oh.size + edge_tgt_ohT.size)
    cost = pl.CostEstimate(flops=flops,
                           transcendentals=(N + E) * H + 2 * N,
                           bytes_accessed=in_bytes + 4 * N)

    vmem = pl.BlockSpec(memory_space=pltpu.MemorySpace.VMEM)
    out = pl.pallas_call(
        nsm_cell_kernel,
        out_shape=jax.ShapeDtypeStruct((1, N), f32),
        in_specs=[vmem] * 9,
        out_specs=vmem,
        cost_estimate=cost,
    )(node_pack, edge_attrs.astype(bf16), batch_pack, w_pack,
      node_oh, node_ohT, edge_b_oh, edge_src_oh, edge_tgt_ohT)
    return out[0]


def nsm_cell_reference(params, node_attrs, edge_indices, edge_attrs, node_indices,
                       edge_batch_indices, instruction_batch, distribution,
                       node_prop_similarities, relation_similarity):
    """Pure-JAX float32 reference mirroring the PyTorch forward exactly."""
    w_np, w_edge, w_ns, w_rs = params
    N = node_attrs.shape[0]
    B = instruction_batch.shape[0]

    x = (node_prop_similarities.T[:, node_indices, None]
         * instruction_batch[node_indices]
         * jnp.transpose(node_attrs, (1, 0, 2)))                                      # (P,N,H)
    node_scores = jax.nn.elu(jnp.sum(jnp.einsum('pnh,phk->pnk', x, w_np), axis=0))    # (N,H)
    edge_scores = jax.nn.elu(
        (instruction_batch[edge_batch_indices] * edge_attrs) @ w_edge)                # (E,H)

    def seg_softmax(s, seg, num_seg):
        m = jax.ops.segment_max(s, seg, num_segments=num_seg)
        e = jnp.exp(s - m[seg])
        z = jax.ops.segment_sum(e, seg, num_segments=num_seg)
        return e / z[seg]

    next_states = seg_softmax(node_scores @ w_ns, node_indices, B)                    # (N,)
    msg = distribution[edge_indices[0], None] * edge_scores                           # (E,H)
    agg = jax.ops.segment_sum(msg, edge_indices[1], num_segments=N)                   # (N,H)
    next_relations = seg_softmax(agg @ w_rs, node_indices, B)                         # (N,)

    rs = relation_similarity[node_indices]
    return rs * next_relations + (1.0 - rs) * next_states


if __name__ == "__main__":
    # Sizes: B graphs, P node properties, H hidden size, N total nodes, E total edges.
    B, P, H = 2, 4, 32
    nodes_per_graph, edges_per_graph = 8, 12
    N, E = B * nodes_per_graph, B * edges_per_graph

    key = jax.random.PRNGKey(0)
    ks = jax.random.split(key, 12)

    # Parameters (torch.rand -> uniform [0,1)), deterministic.
    w_np = jax.random.uniform(ks[0], (P, H, H), jnp.float32)
    w_edge = jax.random.uniform(ks[1], (H, H), jnp.float32)
    w_ns = jax.random.uniform(ks[2], (H,), jnp.float32)
    w_rs = jax.random.uniform(ks[3], (H,), jnp.float32)
    params = (w_np, w_edge, w_ns, w_rs)

    # Graph batch data.
    node_attrs = 0.1 * jax.random.normal(ks[4], (N, P, H), jnp.float32)
    edge_attrs = 0.1 * jax.random.normal(ks[5], (E, H), jnp.float32)
    instruction_batch = 0.1 * jax.random.normal(ks[6], (B, H), jnp.float32)
    node_indices = jnp.repeat(jnp.arange(B, dtype=jnp.int32), nodes_per_graph)    # node -> graph
    edge_batch_indices = jnp.repeat(jnp.arange(B, dtype=jnp.int32), edges_per_graph)

    # Edges stay within their own graph.
    src = jnp.concatenate([
        jax.random.randint(ks[7], (edges_per_graph,), 0, nodes_per_graph, jnp.int32),
        jax.random.randint(ks[8], (edges_per_graph,), 0, nodes_per_graph, jnp.int32) + nodes_per_graph])
    tgt = jnp.concatenate([
        jax.random.randint(ks[9], (edges_per_graph,), 0, nodes_per_graph, jnp.int32),
        jax.random.randint(ks[10], (edges_per_graph,), 0, nodes_per_graph, jnp.int32) + nodes_per_graph])
    edge_indices = jnp.stack([src, tgt])                                          # (2,E)

    distribution = jax.random.uniform(ks[11], (N,), jnp.float32)
    distribution = distribution / jax.ops.segment_sum(
        distribution, node_indices, num_segments=B)[node_indices]
    node_prop_similarities = jax.nn.softmax(
        jax.random.normal(jax.random.PRNGKey(1), (B, P), jnp.float32), axis=-1)
    relation_similarity = jax.random.uniform(jax.random.PRNGKey(2), (B,), jnp.float32)

    args = (params, node_attrs, edge_indices, edge_attrs, node_indices,
            edge_batch_indices, instruction_batch, distribution,
            node_prop_similarities, relation_similarity)

    out = jax.block_until_ready(nsm_cell_forward(*args))
    ref = jax.block_until_ready(nsm_cell_reference(*args))

    assert out.shape == (N,), out.shape
    # Tolerance re-verified for the bf16 data path (one-hots are exact; bf16 attrs /
    # instr / weights contribute ~1e-3-level rounding vs. the pure-f32 reference).
    if not jnp.allclose(out, ref, atol=4e-3, rtol=2e-2):
        raise AssertionError(f"mismatch: max abs err {jnp.max(jnp.abs(out - ref))}")
    print("KERNEL_OK")
</pallas_src>

<mosaic_0001>
module attributes {stable_mosaic.version = 11 : i64} {
  func.func @nsm_cell_kernel(%arg0: memref<16x129xbf16, #tpu.memory_space<vmem>>, %arg1: memref<24x32xbf16, #tpu.memory_space<vmem>>, %arg2: memref<2x161xbf16, #tpu.memory_space<vmem>>, %arg3: memref<162x32xbf16, #tpu.memory_space<vmem>>, %arg4: memref<16x2xbf16, #tpu.memory_space<vmem>>, %arg5: memref<2x16xbf16, #tpu.memory_space<vmem>>, %arg6: memref<24x2xbf16, #tpu.memory_space<vmem>>, %arg7: memref<24x16xbf16, #tpu.memory_space<vmem>>, %arg8: memref<16x24xbf16, #tpu.memory_space<vmem>>, %arg9: memref<1x16xf32, #tpu.memory_space<vmem>>) attributes {dimension_semantics = [], scalar_prefetch = 0 : i64, scratch_operands = 0 : i64, tpu.core_type = #tpu.core_type<tc>} {
    %c0 = arith.constant 0 : index
    %c0_0 = arith.constant 0 : index
    %0 = vector.load %arg0[%c0, %c0_0] : memref<16x129xbf16, #tpu.memory_space<vmem>>, vector<16x129xbf16>
    %c0_1 = arith.constant 0 : index
    %c0_2 = arith.constant 0 : index
    %1 = vector.load %arg2[%c0_1, %c0_2] : memref<2x161xbf16, #tpu.memory_space<vmem>>, vector<2x161xbf16>
    %c0_3 = arith.constant 0 : index
    %c0_4 = arith.constant 0 : index
    %2 = vector.load %arg3[%c0_3, %c0_4] : memref<162x32xbf16, #tpu.memory_space<vmem>>, vector<162x32xbf16>
    %c0_5 = arith.constant 0 : index
    %c0_6 = arith.constant 0 : index
    %3 = vector.load %arg4[%c0_5, %c0_6] : memref<16x2xbf16, #tpu.memory_space<vmem>>, vector<16x2xbf16>
    %c0_7 = arith.constant 0 : index
    %c0_8 = arith.constant 0 : index
    %4 = vector.load %arg5[%c0_7, %c0_8] : memref<2x16xbf16, #tpu.memory_space<vmem>>, vector<2x16xbf16>
    %5 = arith.extf %4 : vector<2x16xbf16> to vector<2x16xf32>
    %6 = vector.extract_strided_slice %1 {offsets = [0, 0], sizes = [2, 128], strides = [1, 1]} : vector<2x161xbf16> to vector<2x128xbf16>
    %cst = arith.constant dense<0.000000e+00> : vector<16x128xf32>
    %7 = tpu.matmul %3, %6, %cst {dimension_numbers = #tpu.dot_dimension_numbers<[1], [0], [0], [1], [0, 0, 1, 1], [], []>} : vector<16x2xbf16>, vector<2x128xbf16>, vector<16x128xf32> -> vector<16x128xf32>
    %8 = vector.extract_strided_slice %0 {offsets = [0, 0], sizes = [16, 128], strides = [1, 1]} : vector<16x129xbf16> to vector<16x128xbf16>
    %9 = arith.extf %8 : vector<16x128xbf16> to vector<16x128xf32>
    %10 = arith.mulf %7, %9 : vector<16x128xf32>
    %11 = arith.truncf %10 : vector<16x128xf32> to vector<16x128xbf16>
    %12 = vector.extract_strided_slice %2 {offsets = [0, 0], sizes = [128, 32], strides = [1, 1]} : vector<162x32xbf16> to vector<128x32xbf16>
    %cst_9 = arith.constant dense<0.000000e+00> : vector<16x32xf32>
    %13 = tpu.matmul %11, %12, %cst_9 {dimension_numbers = #tpu.dot_dimension_numbers<[1], [0], [0], [1], [0, 0, 1, 1], [], []>} : vector<16x128xbf16>, vector<128x32xbf16>, vector<16x32xf32> -> vector<16x32xf32>
    %cst_10 = arith.constant 0.000000e+00 : f32
    %14 = vector.broadcast %cst_10 : f32 to vector<16x32xf32>
    %15 = arith.cmpf ogt, %13, %14 : vector<16x32xf32>
    %cst_11 = arith.constant 0.000000e+00 : f32
    %16 = vector.broadcast %cst_11 : f32 to vector<16x32xf32>
    %17 = arith.minimumf %13, %16 : vector<16x32xf32>
    %18 = math.exp %17 : vector<16x32xf32>
    %cst_12 = arith.constant 1.000000e+00 : f32
    %19 = vector.broadcast %cst_12 : f32 to vector<16x32xf32>
    %20 = arith.subf %18, %19 : vector<16x32xf32>
    %21 = arith.select %15, %13, %20 : vector<16x32xi1>, vector<16x32xf32>
    %c0_13 = arith.constant 0 : index
    %c0_14 = arith.constant 0 : index
    %22 = vector.load %arg6[%c0_13, %c0_14] : memref<24x2xbf16, #tpu.memory_space<vmem>>, vector<24x2xbf16>
    %23 = vector.extract_strided_slice %1 {offsets = [0, 128], sizes = [2, 32], strides = [1, 1]} : vector<2x161xbf16> to vector<2x32xbf16>
    %cst_15 = arith.constant dense<0.000000e+00> : vector<24x32xf32>
    %24 = tpu.matmul %22, %23, %cst_15 {dimension_numbers = #tpu.dot_dimension_numbers<[1], [0], [0], [1], [0, 0, 1, 1], [], []>} : vector<24x2xbf16>, vector<2x32xbf16>, vector<24x32xf32> -> vector<24x32xf32>
    %c0_16 = arith.constant 0 : index
    %c0_17 = arith.constant 0 : index
    %25 = vector.load %arg1[%c0_16, %c0_17] : memref<24x32xbf16, #tpu.memory_space<vmem>>, vector<24x32xbf16>
    %26 = arith.extf %25 : vector<24x32xbf16> to vector<24x32xf32>
    %27 = arith.mulf %24, %26 : vector<24x32xf32>
    %28 = arith.truncf %27 : vector<24x32xf32> to vector<24x32xbf16>
    %29 = vector.extract_strided_slice %2 {offsets = [128, 0], sizes = [32, 32], strides = [1, 1]} : vector<162x32xbf16> to vector<32x32xbf16>
    %cst_18 = arith.constant dense<0.000000e+00> : vector<24x32xf32>
    %30 = tpu.matmul %28, %29, %cst_18 {dimension_numbers = #tpu.dot_dimension_numbers<[1], [0], [0], [1], [0, 0, 1, 1], [], []>} : vector<24x32xbf16>, vector<32x32xbf16>, vector<24x32xf32> -> vector<24x32xf32>
    %cst_19 = arith.constant 0.000000e+00 : f32
    %31 = vector.broadcast %cst_19 : f32 to vector<24x32xf32>
    %32 = arith.cmpf ogt, %30, %31 : vector<24x32xf32>
    %cst_20 = arith.constant 0.000000e+00 : f32
    %33 = vector.broadcast %cst_20 : f32 to vector<24x32xf32>
    %34 = arith.minimumf %30, %33 : vector<24x32xf32>
    %35 = math.exp %34 : vector<24x32xf32>
    %cst_21 = arith.constant 1.000000e+00 : f32
    %36 = vector.broadcast %cst_21 : f32 to vector<24x32xf32>
    %37 = arith.subf %35, %36 : vector<24x32xf32>
    %38 = arith.select %32, %30, %37 : vector<24x32xi1>, vector<24x32xf32>
    %c0_22 = arith.constant 0 : index
    %c0_23 = arith.constant 0 : index
    %39 = vector.load %arg7[%c0_22, %c0_23] : memref<24x16xbf16, #tpu.memory_space<vmem>>, vector<24x16xbf16>
    %40 = vector.extract_strided_slice %0 {offsets = [0, 128], sizes = [16, 1], strides = [1, 1]} : vector<16x129xbf16> to vector<16x1xbf16>
    %cst_24 = arith.constant dense<0.000000e+00> : vector<24x1xf32>
    %41 = tpu.matmul %39, %40, %cst_24 {dimension_numbers = #tpu.dot_dimension_numbers<[1], [0], [0], [1], [0, 0, 1, 1], [], []>} : vector<24x16xbf16>, vector<16x1xbf16>, vector<24x1xf32> -> vector<24x1xf32>
    %42 = vector.broadcast %41 : vector<24x1xf32> to vector<24x32xf32>
    %43 = arith.mulf %42, %38 : vector<24x32xf32>
    %44 = arith.truncf %43 : vector<24x32xf32> to vector<24x32xbf16>
    %c0_25 = arith.constant 0 : index
    %c0_26 = arith.constant 0 : index
    %45 = vector.load %arg8[%c0_25, %c0_26] : memref<16x24xbf16, #tpu.memory_space<vmem>>, vector<16x24xbf16>
    %cst_27 = arith.constant dense<0.000000e+00> : vector<16x32xf32>
    %46 = tpu.matmul %45, %44, %cst_27 {dimension_numbers = #tpu.dot_dimension_numbers<[1], [0], [0], [1], [0, 0, 1, 1], [], []>} : vector<16x24xbf16>, vector<24x32xbf16>, vector<16x32xf32> -> vector<16x32xf32>
    %47 = vector.extract_strided_slice %2 {offsets = [160, 0], sizes = [2, 32], strides = [1, 1]} : vector<162x32xbf16> to vector<2x32xbf16>
    %48 = arith.extf %47 : vector<2x32xbf16> to vector<2x32xf32>
    %49 = vector.extract_strided_slice %48 {offsets = [0, 0], sizes = [1, 32], strides = [1, 1]} : vector<2x32xf32> to vector<1x32xf32>
    %cst_28 = arith.constant dense<0.000000e+00> : vector<1x16xf32>
    %50 = tpu.matmul %49, %21, %cst_28 {dimension_numbers = #tpu.dot_dimension_numbers<[1], [1], [0], [0], [0, 0, 1, 0], [], []>} : vector<1x32xf32>, vector<16x32xf32>, vector<1x16xf32> -> vector<1x16xf32>
    %51 = vector.extract_strided_slice %48 {offsets = [1, 0], sizes = [1, 32], strides = [1, 1]} : vector<2x32xf32> to vector<1x32xf32>
    %cst_29 = arith.constant dense<0.000000e+00> : vector<1x16xf32>
    %52 = tpu.matmul %51, %46, %cst_29 {dimension_numbers = #tpu.dot_dimension_numbers<[1], [1], [0], [0], [0, 0, 1, 0], [], []>} : vector<1x32xf32>, vector<16x32xf32>, vector<1x16xf32> -> vector<1x16xf32>
    %53 = tpu.concatenate %50, %52 in 0 : vector<1x16xf32>, vector<1x16xf32> -> vector<2x16xf32>
    %54 = vector.shape_cast %5 : vector<2x16xf32> to vector<1x2x16xf32>
    %cst_30 = arith.constant 0.000000e+00 : f32
    %55 = vector.broadcast %cst_30 : f32 to vector<1x2x16xf32>
    %56 = arith.cmpf ogt, %54, %55 : vector<1x2x16xf32>
    %57 = vector.shape_cast %53 : vector<2x16xf32> to vector<2x1x16xf32>
    %cst_31 = arith.constant -1.000000e+30 : f32
    %58 = vector.shape_cast %56 : vector<1x2x16xi1> to vector<1x2x16xi1>
    %59 = vector.broadcast %58 : vector<1x2x16xi1> to vector<2x2x16xi1>
    %60 = vector.shape_cast %57 : vector<2x1x16xf32> to vector<2x1x16xf32>
    %61 = vector.broadcast %60 : vector<2x1x16xf32> to vector<2x2x16xf32>
    %62 = vector.broadcast %cst_31 : f32 to vector<2x2x16xf32>
    %63 = arith.select %59, %61, %62 : vector<2x2x16xi1>, vector<2x2x16xf32>
    %cst_32 = arith.constant dense<0xFF800000> : vector<2x2xf32>
    %64 = vector.multi_reduction <maximumf>, %63, %cst_32 [2] : vector<2x2x16xf32> to vector<2x2xf32>
    %cst_33 = arith.constant dense<0.000000e+00> : vector<2x16xf32>
    %65 = tpu.matmul %64, %5, %cst_33 {dimension_numbers = #tpu.dot_dimension_numbers<[1], [0], [0], [1], [0, 0, 1, 1], [], []>} : vector<2x2xf32>, vector<2x16xf32>, vector<2x16xf32> -> vector<2x16xf32>
    %66 = arith.subf %53, %65 : vector<2x16xf32>
    %67 = math.exp %66 : vector<2x16xf32>
    %cst_34 = arith.constant dense<0.000000e+00> : vector<2x2xf32>
    %68 = tpu.matmul %67, %5, %cst_34 {dimension_numbers = #tpu.dot_dimension_numbers<[1], [1], [0], [0], [0, 0, 1, 0], [], []>} : vector<2x16xf32>, vector<2x16xf32>, vector<2x2xf32> -> vector<2x2xf32>
    %cst_35 = arith.constant dense<0.000000e+00> : vector<2x16xf32>
    %69 = tpu.matmul %68, %5, %cst_35 {dimension_numbers = #tpu.dot_dimension_numbers<[1], [0], [0], [1], [0, 0, 1, 1], [], []>} : vector<2x2xf32>, vector<2x16xf32>, vector<2x16xf32> -> vector<2x16xf32>
    %70 = arith.divf %67, %69 : vector<2x16xf32>
    %71 = vector.extract_strided_slice %1 {offsets = [0, 160], sizes = [2, 1], strides = [1, 1]} : vector<2x161xbf16> to vector<2x1xbf16>
    %72 = arith.extf %71 : vector<2x1xbf16> to vector<2x1xf32>
    %73 = vector.broadcast %72 : vector<2x1xf32> to vector<2x16xf32>
    %74 = arith.mulf %73, %5 : vector<2x16xf32>
    %cst_36 = arith.constant dense<0.000000e+00> : vector<16xf32>
    %75 = vector.multi_reduction <add>, %74, %cst_36 [0] : vector<2x16xf32> to vector<16xf32>
    %76 = vector.shape_cast %75 : vector<16xf32> to vector<1x16xf32>
    %77 = vector.extract_strided_slice %70 {offsets = [1, 0], sizes = [1, 16], strides = [1, 1]} : vector<2x16xf32> to vector<1x16xf32>
    %78 = arith.mulf %76, %77 : vector<1x16xf32>
    %cst_37 = arith.constant 1.000000e+00 : f32
    %79 = vector.broadcast %cst_37 : f32 to vector<1x16xf32>
    %80 = arith.subf %79, %76 : vector<1x16xf32>
    %81 = vector.extract_strided_slice %70 {offsets = [0, 0], sizes = [1, 16], strides = [1, 1]} : vector<2x16xf32> to vector<1x16xf32>
    %82 = arith.mulf %80, %81 : vector<1x16xf32>
    %83 = arith.addf %78, %82 : vector<1x16xf32>
    %c0_38 = arith.constant 0 : index
    %c0_39 = arith.constant 0 : index
    %84 = vector.load %arg9[%c0_38, %c0_39] : memref<1x16xf32, #tpu.memory_space<vmem>>, vector<1x16xf32>
    tpu.vector_store %arg9[%c0_38, %c0_39], %83 {strides = array<i32>} : memref<1x16xf32, #tpu.memory_space<vmem>>, vector<1x16xf32>,
    return
  }
}

</mosaic_0001>

<bundles_post_ra>
// kernel: tpu_custom_call.1
= control target key start
LH: loop header
LB: loop body
LE: loop exit
PB: predicated region body
PF: predicated region fallthrough
CT: control target
= control target key end

     0   :  { %vm71_vm0 = vcmask 1040384   ;;  %v237_v1 = vlaneseq  ;;  %v1277_v2 = vmov 0.0   ;;  %v1278_v4 = vmov 1966171168   ;;  %s1486_s0 = inlined_call_operand.vmem [shape: bf16[16,129], index: 0, kind: input, shape index: {}]   ;;  %s1487_s1 = inlined_call_operand.vmem [shape: bf16[24,32], index: 1, kind: input, shape index: {}]   ;;  %s1488_s2 = inlined_call_operand.vmem [shape: bf16[2,161], index: 2, kind: input, shape index: {}]   ;;  %s1489_s3 = inlined_call_operand.vmem [shape: bf16[162,32], index: 3, kind: input, shape index: {}]   ;;  %s1490_s4 = inlined_call_operand.vmem [shape: bf16[16,2], index: 4, kind: input, shape index: {}]   ;;  %s1491_s5 = inlined_call_operand.vmem [shape: bf16[2,16], index: 5, kind: input, shape index: {}]   ;;  %s1492_s6 = inlined_call_operand.vmem [shape: bf16[24,2], index: 6, kind: input, shape index: {}]   ;;  %s1493_s7 = inlined_call_operand.vmem [shape: bf16[24,16], index: 7, kind: input, shape index: {}]   ;;  %s1494_s8 = inlined_call_operand.vmem [shape: bf16[16,24], index: 8, kind: input, shape index: {}]   ;;  %s1495_s9 = inlined_call_operand.hbm [shape: f32[1,16], index: 9, kind: output, shape index: {}]  }
   0x1   :  { %v1337_v0 = vld [vmem:[%s1488_s2] sm:$0x3]  ;;  %1131 = vmatprep.subr.bf16.mxu0 %v1277_v2  ;;  %v235_v5 = vunpack.c.l.s4 %v1278_v4  ;;  %1137 = vmatprep.subr.bf16.mxu1 %v1277_v2  ;;  %vm1279_vm1 = vmmov 0   ;;  %vm67_vm2 = vcmask 15360   ;;  %v1227_v10 = vld [vmem:[%s1489_s3 + $0x38] sm:$0xff]   ;;  %v1228_v12 = vld [vmem:[%s1489_s3 + $0x30] sm:$0xff]  }
   0x2   :  { %v73_v3 = vsel %vm71_vm0, %v1337_v0, 0  ;;  %v1344_v6 = vshrl.u32 %v237_v1, 7  ;;  %1133 = vmatprep.mubr.msk.bf16.mxu0 %vm1279_vm1, %v1277_v2  ;;  %v1224_v7 = vld [vmem:[%s1490_s4] sm:$0xff]   ;;  %1153 = vmatprep.mubr.msk.bf16.mxu1 %vm1279_vm1, %v1277_v2  ;;  %v1229_v15 = vld [vmem:[%s1489_s3 + $0x28] sm:$0xff]  }
   0x3   :  { %1132 = vmatpush3.bf16.msra.mxu0 %v73_v3  ;;  %v1225_v8 = vld [vmem:[%s1492_s6] sm:$0xff]   ;;  %v236_v9 = vunpack.c.0.s8 %v235_v5  ;;  %1138 = vmatpush3.bf16.msra.mxu1 %v1227_v10  ;;  %v1226_v17 = vld [vmem:[%s1492_s6 + $0x8] ss:$0 sps:$4 sm:$0xff]  }
   0x4   :  { %1139 = vmatprep.subr.bf16.mxu1 %v1277_v2  ;;  %v1230_v19 = vld [vmem:[%s1489_s3 + $0x20] sm:$0xff]  }
   0x5   :  { %v1360_v11 = vsub.s32 %v236_v9, %v1344_v6 }
   0x6   :  { %1134 = vmatmul.mubr.msk.bf16.vlgmr.msra.gmra.mxu0 %vm67_vm2, %v1224_v7 }
   0x7   :  { %1159 = vmatprep.mubr.msk.bf16.mxu0 %vm67_vm2, %v1225_v8  ;;  %v240_v13 = vrot.slane %v1337_v0, %v1360_v11  ;;  %1140 = vmatpush3.bf16.msra.mxu1 %v1228_v12 }
   0x8   :  { %1141 = vmatprep.subr.bf16.mxu1 %v1277_v2 }
   0x9   :  { %v241_v14 = vcombine.high %v240_v13, %v240_v13 }
   0xb   :  { %v248_v16 = vrot.slane %v241_v14, %v1360_v11  ;;  %1142 = vmatpush3.bf16.msra.mxu1 %v1229_v15 }
   0xc   :  { %1143 = vmatprep.subr.bf16.mxu1 %v1277_v2 }
   0xd   :  { %1214 = vmatprep.subr.msk.bf16.mxu0 %vm71_vm0, %v248_v16  ;;  %v256_v18 = vsel %vm71_vm0, %v248_v16, 0 }
   0xe   :  { %1158 = vmatpush3.bf16.msra.mxu0 %v256_v18 }
   0xf   :  { %14 = vsyncpa [#allocation3], 0  ;;  %1144 = vmatpush3.bf16.msra.mxu1 %v1230_v19  ;;  %v1231_v20 = vld [vmem:[%s1489_s3 + $0x18] sm:$0xff]   ;;  %v1232_v21 = vld [vmem:[%s1489_s3 + $0x10] sm:$0xff]   ;;  %vm329_vm3 = vcmask 261120   ;;  %vm419_vm4 = vcmask 130048  }
  0x10   :  { %1145 = vmatprep.subr.bf16.mxu1 %v1277_v2  ;;  %v1233_v22 = vld [vmem:[%s1489_s3 + $0x8] sm:$0xff]   ;;  %v1234_v23 = vld [vmem:[%s1489_s3] sm:$0xff]   ;;  %v1280_v54 = vmov 0   ;;  %vm505_vm8 = vcmask 1043456   ;;  %vm501_vm11 = vcmask 195584   ;;  %vm751_vm13 = vcmask 123904  }
  0x11   :  { %1160 = vmatmul.mubr.msk.bf16.vlgmr.msra.gmra.mxu0 %vm67_vm2, %v1226_v17  ;;  %v1235_v24 = vld [vmem:[%s1489_s3 + $0x48] sm:$0xff]   ;;  %v1236_v25 = vld [vmem:[%s1489_s3 + $0x40] sm:$0xff]   ;;  %1222 = vset.pattern.permute.xlu0 %v1280_v54  ;;  %vm774_vm14 = vcmask 1041408   ;;  %vm770_vm15 = vcmask 1041409   ;;  %s1283_s6 = smov [#allocation2]  }
  0x12   :  { %1163 = vmatprep.subr.bf16.mxu0 %v1235_v24  ;;  %v34_v26 = vld [vmem:[%s1486_s0] sm:$0xff]  ;;  %v35_v27 = vld [vmem:[%s1486_s0 + $0x8] sm:$0xff]  ;;  %1223 = vset.pattern.permute.xlu1 %v1280_v54  ;;  %s1041_s24 = sshll.u32 %s1283_s6, 4  ;;  %s1042_s24 = int_to_ptr.vmem [resolvable:$true] %s1041_s24 }
  0x13   :  { %1146 = vmatpush3.bf16.msra.mxu1 %v1231_v20  ;;  %1164 = vmatpush3.bf16.msra.mxu0 %v1235_v24  ;;  %v1074_v28 = vcombine.high %v34_v26, %v35_v27  ;;  %v116_v29 = vunpack.c.l.bf16 %v34_v26  ;;  %v117_v31 = vunpack.c.l.bf16 %v35_v27  ;;  %v308_v38 = vld [vmem:[%s1487_s1 + $0x8] sm:$0xf]  ;;  %v1092_v40 = vld [vmem:[%s1487_s1] sm:$0xff]   ;;  %s1255_s25 = scalar_lea.vmem %s1042_s24, 16  ;;  %s1259_s26 = scalar_lea.vmem %s1042_s24, 32 }
  0x14   :  { %1147 = vmatprep.subr.bf16.mxu1 %v1277_v2  ;;  %1165 = vmatprep.subr.bf16.mxu0 %v1236_v25  ;;  %v311_v41 = vunpack.c.l.bf16 %v308_v38  ;;  %v1093_v43 = vunpack.c.l.bf16 %v1092_v40  ;;  %v1094_v44 = vunpack.c.h.bf16 %v1092_v40  ;;  %v1238_v51 = vld [vmem:[%s1493_s7] sm:$0xff]   ;;  %v1239_v53 = vld [vmem:[%s1493_s7 + $0x8] ss:$0 sps:$4 sm:$0xff]   ;;  %p1256_p0 = scmp.ne.s32.totalorder %s1042_s24, %s1255_s25  ;;  %p1260_p1 = scmp.lt.s32.totalorder %s1042_s24, %s1042_s24 }
  0x15   :  { %p1261_p2 = scmp.lt.s32.totalorder %s1259_s26, %s1255_s25 }
  0x17   :  { %1148 = vmatpush3.bf16.msra.mxu1 %v1232_v21  ;;  %1166 = vmatpush3.bf16.msra.mxu0 %v1236_v25  ;;  %p1262_p3 = por %p1261_p2, %p1260_p1 }
  0x18   :  { %1149 = vmatprep.subr.bf16.mxu1 %v1277_v2  ;;  %1171 = vmatprep.subr.bf16.mxu0 %v1074_v28 }
  0x19   :  { %p1263_p4 = pnand %p1262_p3, %p1256_p0 }
  0x1b   :  { %1150 = vmatpush3.bf16.msra.mxu1 %v1233_v22 }
  0x1c   :  { %1151 = vmatprep.subr.bf16.mxu1 %v1277_v2 }
  0x1f   :  { %1152 = vmatpush3.bf16.msra.mxu1 %v1234_v23 }
  0x20   :  { %1185 = vmatprep.subr.mxu1 %v1277_v2 }
  0xc6   :  { %v109_v30 = vpop.f32.mrf.mxu0 }
  0xc7   :  { %v118_v33 = vmul.f32 %v116_v29, %v109_v30 }
  0xc8   :  { %v1135_v32 = vpop.f32.mrf.mxu0 }
  0xca   :  { %v112_v34 = vpop.f32.mrf.mxu0 }
  0xcb   :  { %v119_v35 = vmul.f32 %v117_v31, %v112_v34 }
  0xcc   :  { %v1136_v36 = vpop.f32.mrf.mxu0 }
  0xcd   :  { %v120_v37 = vpack.c.bf16 %v119_v35, %v118_v33 }
  0xcf   :  { %1154 = vmatmul.mubr.bf16.vlgmr.msra.gmra.mxu1 %v120_v37 }
  0xd0   :  { %1189 = vmatprep.mubr.msk.f32.mxu1 %vm1279_vm1, %v1277_v2 }
  0xd1   :  { %v1161_v39 = vpop.f32.mrf.mxu0 }
  0xd2   :  { %v314_v46 = vmul.f32 %v1161_v39, %v311_v41 }
  0xd3   :  { %v292_v42 = vpop.f32.mrf.mxu0 }
  0xd4   :  { %v312_v48 = vmul.f32 %v1093_v43, %v292_v42  ;;  %v316_v52 = vpack.c.bf16 %v314_v46, %v314_v46  ;;  %v1240_v42 = vld [vmem:[%s1494_s8] sm:$0xff]   ;;  %v57_v43 = vld [vmem:[%s1489_s3 + $0x50] sm:$0x1] }
  0xd5   :  { %v1162_v45 = vpop.f32.mrf.mxu0 }
  0xd7   :  { %v295_v47 = vpop.f32.mrf.mxu0 }
  0xd8   :  { %v313_v49 = vmul.f32 %v1094_v44, %v295_v47  ;;  %v550_v44 = vunpack.c.l.bf16 %v57_v43 }
  0xda   :  { %v315_v50 = vpack.c.bf16 %v313_v49, %v312_v48  ;;  %v630_v49 = vrot.slane %v550_v44, 1 }
  0xdc   :  { %1167 = vmatprep.mubr.msk.bf16.mxu0 %vm329_vm3, %v315_v50 }
  0xdd   :  { %1168 = vmatmul.mubr.msk.bf16.vlgmr.msra.gmra.mxu0 %vm329_vm3, %v316_v52  ;;  %v60_v52 = vld [vmem:[%s1491_s5] sm:$0x1]  ;;  %s1281_s5 = smov 96  }
  0xde   :  { %1172 = vmatpush3.bf16.msra.mxu0 %v1074_v28  ;;  %1173 = vmatprep.mubr.msk.bf16.mxu0 %vm419_vm4, %v1238_v51 }
  0xdf   :  { %1177 = vmatprep.subr.bf16.mxu0 %v1277_v2 }
  0xe5   :  { %1174 = vmatmul.mubr.msk.bf16.vlgmr.msra.gmra.mxu0 %vm419_vm4, %v1239_v53  ;;  %v61_v53 = vunpack.c.l.bf16 %v60_v52 }
  0xe6   :  { %1181 = vmatprep.mubr.msk.bf16.mxu0 %vm1279_vm1, %v1277_v2 }
  0xe7   :  { %vm713_vm12 = vcmp.gt.f32.partialorder %v61_v53, 0.0 }
 0x18f   :  { %v203_v55 = vpop.f32.mrf.mxu1 }
 0x190   :  { %v212_v56 = vmin.f32 %v203_v55, 0.0  ;;  %vm210_vm6 = vcmp.gt.f32.partialorder %v203_v55, 0.0 }
 0x191   :  { %v1155_v57 = vpop.f32.mrf.mxu1 }
 0x192   :  { %v214_v58 = vmul.f32 1.442695, %v212_v56 }
 0x193   :  { %v206_v59 = vpop.f32.mrf.mxu1 }
 0x194   :  { %v213_v60 = vmin.f32 %v206_v59, 0.0  ;;  %1241 = vpow2.f32 %v214_v58  ;;  %vm211_vm5 = vcmp.gt.f32.partialorder %v206_v59, 0.0 }
 0x195   :  { %v1156_v61 = vpop.f32.mrf.mxu1 }
 0x196   :  { %v216_v62 = vmul.f32 1.442695, %v213_v60 }
 0x198   :  { %1243 = vpow2.f32 %v216_v62 }
 0x19d   :  { %v1169_v63 = vpop.f32.mrf.mxu0 }
 0x19e   :  { %v389_v18 = vmin.f32 %v1169_v63, 0.0  ;;  %vm386_vm7 = vcmp.gt.f32.partialorder %v1169_v63, 0.0 }
 0x19f   :  { %v370_v3 = vpop.f32.mrf.mxu0 }
 0x1a0   :  { %v394_v19 = vmul.f32 1.442695, %v389_v18  ;;  %v387_v20 = vmin.f32 %v370_v3, 0.0  ;;  %vm384_vm9 = vcmp.gt.f32.partialorder %v370_v3, 0.0 }
 0x1a1   :  { %v1170_v4 = vpop.f32.mrf.mxu0  ;;  %v1242_v5 = vpop.eup %1241 }
 0x1a2   :  { %v1059_v12 = vadd.f32 -1.0, %v1242_v5  ;;  %1245 = vpow2.f32 %v394_v19  ;;  %v390_v22 = vmul.f32 1.442695, %v387_v20 }
 0x1a3   :  { %v373_v7 = vpop.f32.mrf.mxu0 }
 0x1a4   :  { %v220_v16 = vsel %vm210_vm6, %v203_v55, %v1059_v12  ;;  %v388_v21 = vmin.f32 %v373_v7, 0.0  ;;  %1247 = vpow2.f32 %v390_v22  ;;  %vm385_vm10 = vcmp.gt.f32.partialorder %v373_v7, 0.0 }
 0x1a5   :  { %v1244_v8 = vpop.eup %1243  ;;  %v1175_v10 = vpop.f32.mrf.mxu0 }
 0x1a6   :  { %v1060_v9 = vadd.f32 -1.0, %v1244_v8  ;;  %486 = vperm.xlu0 %1222, %v1175_v10   ;;  %v392_v23 = vmul.f32 1.442695, %v388_v21 }
 0x1a7   :  { %v460_v14 = vpop.f32.mrf.mxu0 }
 0x1a8   :  { %v221_v13 = vsel %vm211_vm5, %v206_v59, %v1060_v9  ;;  %1249 = vpow2.f32 %v392_v23  ;;  %v741_v59 = vsub.s32 0, %v1344_v6  ;;  %v761_v9 = vand.u32 127, %v237_v1 }
 0x1a9   :  { %1186 = vmatpush3.xpose.msk.msra.mxu1 %vm329_vm3, %v221_v13  ;;  %v1176_v15 = vpop.f32.mrf.mxu0 }
 0x1aa   :  { %1187 = vmatprep.subr.mxu1 %v1277_v2  ;;  %476 = vperm.xlu0 %1222, %v460_v14  }
 0x1ab   :  { %v463_v17 = vpop.f32.mrf.mxu0 }
 0x1ac   :  { %481 = vperm.xlu1 %1223, %v463_v17  }
 0x1ad   :  { %1188 = vmatpush3.xpose.msk.msra.mxu1 %vm329_vm3, %v220_v16 }
 0x1ae   :  { %1199 = vmatprep.subr.mxu1 %v1277_v2 }
 0x1af   :  { %v1246_v24 = vpop.eup %1245 }
 0x1b0   :  { %v1071_v25 = vadd.f32 -1.0, %v1246_v24  ;;  %1190 = vmatmul.mubr.msk.f32.vlgmr.msra.gmra.mxu1 %vm329_vm3, %v550_v44  ;;  %v1282_v24 = vmov 269488144  }
 0x1b1   :  { %v1248_v26 = vpop.eup %1247  ;;  %1201 = vmatprep.mubr.msk.f32.mxu1 %vm1279_vm1, %v1277_v2  ;;  %1200 = vmatpush3.msk.msra.mxu1 %vm774_vm14, %v61_v53 }
 0x1b2   :  { %v401_v28 = vsel %vm386_vm7, %v1169_v63, %v1071_v25  ;;  %v1069_v31 = vadd.f32 -1.0, %v1248_v26  ;;  %1209 = vmatprep.subr.mxu1 %v1277_v2  ;;  %v1012_v25 = vunpack.c.l.s4 %v1282_v24 }
 0x1b4   :  { %v399_v36 = vsel %vm384_vm9, %v370_v3, %v1069_v31  ;;  %v1013_v26 = vunpack.c.0.s8 %v1012_v25 }
 0x1b5   :  { %v1250_v27 = vpop.eup %1249 }
 0x1b6   :  { %v1070_v32 = vadd.f32 -1.0, %v1250_v27  ;;  %v1016_v27 = vsub.s32 %v1013_v26, %v1344_v6 }
 0x1b8   :  { %v400_v37 = vsel %vm385_vm10, %v373_v7, %v1070_v32 }
 0x221   :  { %v487_v29 = vpop.permute.xlu0 %486 }
 0x222   :  { %v491_v30 = vmul.f32 %v487_v29, %v401_v28 }
 0x224   :  { %v493_v33 = vpack.c.bf16 %v491_v30, %v491_v30 }
 0x225   :  { %v477_v34 = vpop.permute.xlu0 %476 }
 0x226   :  { %v507_v35 = vsel %vm505_vm8, %v493_v33, 0  ;;  %v489_v39 = vmul.f32 %v477_v34, %v399_v36 }
 0x227   :  { %1178 = vmatpush3.bf16.msra.mxu0 %v507_v35  ;;  %v482_v38 = vpop.permute.xlu1 %481 }
 0x228   :  { %v490_v40 = vmul.f32 %v482_v38, %v400_v37  ;;  %1179 = vmatprep.subr.bf16.mxu0 %v1277_v2 }
 0x22a   :  { %v492_v41 = vpack.c.bf16 %v490_v40, %v489_v39 }
 0x22c   :  { %1180 = vmatpush3.bf16.msra.mxu0 %v492_v41 }
 0x22d   :  { %1192 = vmatprep.subr.mxu0 %v1277_v2 }
 0x22f   :  { %1182 = vmatmul.mubr.msk.bf16.vlgmr.msra.gmra.mxu0 %vm501_vm11, %v1240_v42 }
 0x230   :  { %1196 = vmatprep.mubr.msk.f32.mxu0 %vm1279_vm1, %v1277_v2 }
 0x270   :  { %v626_v50 = vpop.f32.mrf.mxu1 }
 0x272   :  { %v1191_v51 = vpop.f32.mrf.mxu1 }
 0x2ef   :  { %v543_v45 = vpop.f32.mrf.mxu0 }
 0x2f1   :  { %v1183_v46 = vpop.f32.mrf.mxu0 }
 0x2f3   :  { %v546_v47 = vpop.f32.mrf.mxu0 }
 0x2f4   :  { %1193 = vmatpush3.xpose.msk.msra.mxu0 %vm329_vm3, %v546_v47 }
 0x2f5   :  { %v1184_v48 = vpop.f32.mrf.mxu0  ;;  %1194 = vmatprep.subr.mxu0 %v1277_v2 }
 0x2f8   :  { %1195 = vmatpush3.xpose.msk.msra.mxu0 %vm329_vm3, %v543_v45 }
 0x2f9   :  { %1204 = vmatprep.subr.mxu0 %v1277_v2 }
 0x2fb   :  { %1197 = vmatmul.mubr.msk.f32.vlgmr.msra.gmra.mxu0 %vm329_vm3, %v630_v49 }
 0x2fc   :  { %1206 = vmatprep.mubr.msk.f32.mxu0 %vm1279_vm1, %v1277_v2  ;;  %1205 = vmatpush3.xpose.msk.msra.mxu0 %vm419_vm4, %v61_v53 }
 0x3bb   :  { %v705_v54 = vpop.f32.mrf.mxu0 }
 0x3bc   :  { %v710_v55 = vrot.slane %v705_v54, 7 }
 0x3bd   :  { %v1198_v56 = vpop.f32.mrf.mxu0 }
 0x3be   :  { %v712_v57 = vsel %vm71_vm0, %v626_v50, %v710_v55  ;;  %vm1033_vm0 = vcmask 123905  }
 0x3bf   :  { %v721_v58 = vrot.slane %v712_v57, %v1360_v11 }
 0x3c1   :  { %v722_v60 = vcombine.high %v721_v58, %v721_v58  ;;  %v729_v61 = vrot.slane %v721_v58, %v1360_v11 }
 0x3c3   :  { %v742_v62 = vrot.slane %v729_v61, %v741_v59  ;;  %v736_v63 = vrot.slane %v722_v60, %v1360_v11  ;;  %v764_v11 = vsub.s32 %v761_v9, %v1344_v6 }
 0x3c5   :  { %v749_v3 = vsel %vm713_vm12, %v742_v62, -1e+30  ;;  %v746_v4 = vrot.slane %v736_v63, %v741_v59 }
 0x3c6   :  { %v752_v5 = vsel %vm751_vm13, %v749_v3, -inf }
 0x3c7   :  { %753 = vmax.xlane.f32.xlu1 %v752_v5  ;;  %v750_v7 = vsel %vm713_vm12, %v746_v4, -1e+30 }
 0x3c8   :  { %v755_v8 = vsel %vm751_vm13, %v750_v7, -inf }
 0x3c9   :  { %756 = vmax.xlane.f32.xlu0 %v755_v8 }
 0x3df   :  { %1001 = vrot.lane.b32.xlu0 %v1337_v0, %s1281_s5 }
 0x450   :  { %v754_v10 = vpop.xlane.xlu1 %753 }
 0x451   :  { %v765_v13 = vrot.slane %v754_v10, %v764_v11 }
 0x452   :  { %v757_v12 = vpop.xlane.xlu0 %756 }
 0x453   :  { %v769_v14 = vrot.slane %v757_v12, %v764_v11 }
 0x455   :  { %v771_v15 = vsel %vm770_vm15, %v769_v14, %v765_v13 }
 0x456   :  { %1202 = vmatmul.mubr.msk.f32.vlgmr.msra.gmra.mxu1 %vm67_vm2, %v771_v15  ;;  %v1002_v16 = vpop.permute.xlu0 %1001 }
 0x457   :  { %v1003_v17 = vrot.slane %v1002_v16, 1  ;;  %1210 = vmatpush3.msk.msra.mxu1 %vm774_vm14, %v61_v53  ;;  %1211 = vmatprep.mubr.msk.f32.mxu1 %vm1279_vm1, %v1277_v2 }
 0x459   :  { %v1005_v0 = vunpack.c.l.bf16 %v1003_v17 }
 0x45b   :  { %1008 = vperm.xlu1 %1223, %v1005_v0  }
 0x4d6   :  { %v1009_v2 = vpop.permute.xlu1 %1008 }
 0x4d7   :  { %v1017_v28 = vrot.slane %v1009_v2, %v1016_v27 }
 0x4d9   :  { %v1018_v29 = vmul.f32 %v1017_v28, %v61_v53 }
 0x4db   :  { %v1019_v30 = vsel %vm751_vm13, %v1018_v29, 0.0 }
 0x4dc   :  { %v1020_v31 = vrot.slane %v1019_v30, 4 }
 0x4de   :  { %v1021_v32 = vadd.f32 %v1020_v31, %v1019_v30 }
 0x4e0   :  { %v1022_v33 = vrot.slane %v1021_v32, 2 }
 0x4e2   :  { %v1023_v36 = vadd.f32 %v1022_v33, %v1021_v32 }
 0x4e4   :  { %v1024_v37 = vrot.slane %v1023_v36, 1 }
 0x4e6   :  { %v1025_v38 = vadd.f32 %v1024_v37, %v1023_v36 }
 0x4e8   :  { %v1027_v41 = vsub.f32 1.0, %v1025_v38 }
 0x516   :  { %v844_v1 = vpop.f32.mrf.mxu1 }
 0x517   :  { %v848_v18 = vsub.f32 %v712_v57, %v844_v1 }
 0x518   :  { %v1203_v19 = vpop.f32.mrf.mxu1 }
 0x519   :  { %v849_v20 = vmul.f32 1.442695, %v848_v18 }
 0x51b   :  { %1251 = vpow2.f32 %v849_v20 }
 0x528   :  { %v1252_v21 = vpop.eup %1251 }
 0x529   :  { %1207 = vmatmul.mubr.msk.f32.vlgmr.msra.gmra.mxu0 %vm419_vm4, %v1252_v21 }
 0x5e9   :  { %v922_v22 = vpop.f32.mrf.mxu0 }
 0x5ea   :  { %1212 = vmatmul.mubr.msk.f32.vlgmr.msra.gmra.mxu1 %vm67_vm2, %v922_v22 }
 0x5eb   :  { %v1208_v23 = vpop.f32.mrf.mxu0 }
 0x6aa   :  { %v995_v34 = vpop.f32.mrf.mxu1 }
 0x6ab   :  { %1253 = vrcp.f32 %v995_v34 }
 0x6ac   :  { %v1213_v35 = vpop.f32.mrf.mxu1 }
 0x6b8   :  { %v1254_v39 = vpop.eup %1253 }
 0x6b9   :  { %v1000_v40 = vmul.f32 %v1254_v39, %v1252_v21 }
 0x6bb   :  { %v1028_v42 = vmul.f32 %v1027_v41, %v1000_v40  ;;  %v1026_v6 = vmul.f32 %v1025_v38, %v1000_v40 }
 0x6bd   :  { %v1030_v43 = vrot.slane %v1028_v42, 7 }
 0x6bf   :  { %v1032_v44 = vadd.f32 %v1030_v43, %v1026_v6 }
 0x6c1   :  { %1034 = vst.msk [vmem:[#allocation2 - $0x1] sm:$0x2] %vm1033_vm0, %v1032_v44 }
 0x6c2   :  { %1266 = shalt.err (!%p1263_p4)
}
 0x6c3   :  { %1044 = dma.vmem_to_hbm [thread:$0]  %s1042_s24, 16, %s1495_s9, [#allocation3]  }
 0x6c4   :  { %1275 = dma.done.wait [#allocation3], 16  }
 0x6c5   :  { %1276 = vsyncadd [#allocation3], 4294967280 }
 0x6c6   :  { %1048 = vsyncpa [#allocation3], 1 }

</bundles_post_ra>
